<compile_context>
chip_gen: v6e
topology: v6e:2x2x1
jax: 0.10.0
libtpu: 0.0.40
codegen_flags: <defaults>
</compile_context>

<pallas_src>
import jax
import jax.numpy as jnp
from jax.experimental import pallas as pl
from jax.experimental.pallas import tpu as pltpu


def _hbm_copy_kernel(x_hbm_ref, o_hbm_ref, sem):
    # Identity copy: one direct HBM->HBM DMA.  Zero compute, zero VMEM
    # staging, zero tiling -> runs at DMA-engine / HBM bandwidth, which is
    # the 1-read + 1-write roofline for a copy on all TPU generations.
    cp = pltpu.make_async_copy(x_hbm_ref, o_hbm_ref, sem)
    cp.start()
    cp.wait()


def pallas_copy(x):
    """Explicit on-device identity copy into a fresh HBM buffer.

    Both operands stay in HBM (memory_space=pl.ANY); a single async DMA
    copies the whole array.  No padding, no reshape, no slice, no VMEM.
    """
    return pl.pallas_call(
        _hbm_copy_kernel,
        out_shape=jax.ShapeDtypeStruct(x.shape, x.dtype),
        in_specs=[pl.BlockSpec(memory_space=pl.ANY)],
        out_specs=pl.BlockSpec(memory_space=pl.ANY),
        scratch_shapes=[pltpu.SemaphoreType.DMA],
    )(x)


def example_model_forward(imgs, test_mode=False, materialize=False, **kwargs):
    """Pallas equivalent of ExampleModel.forward: returns imgs unchanged.

    The fastest identity is no kernel, so by default this is a pure
    pass-through (zero HBM traffic, zero launch cost).  Set materialize=True
    to force a fresh on-device buffer via a single HBM->HBM DMA kernel.
    """
    del test_mode, kwargs
    if materialize:
        return pallas_copy(imgs)
    return imgs


def init_params(key):
    """Deterministic init of the (unused-in-forward) Conv2d(3, 3, 3) params.

    Kept for shape fidelity with the PyTorch module; forward() never touches
    them, matching the reference semantics.
    """
    k_w, k_b = jax.random.split(key)
    weight = jax.random.normal(k_w, (3, 3, 3, 3), dtype=jnp.float32) * 0.1
    bias = jax.random.normal(k_b, (3,), dtype=jnp.float32) * 0.1
    return {"conv": {"weight": weight, "bias": bias}}


def train_step(params, data_batch):
    """Mirrors ExampleModel.train_step: dict(result=forward(data_batch))."""
    rlt = example_model_forward(data_batch)
    return dict(result=rlt)


if __name__ == "__main__":
    key = jax.random.PRNGKey(0)
    k_params, k_imgs, k_big, k_odd = jax.random.split(key, 4)

    params = init_params(k_params)

    # NCHW input consistent with Conv2d(3, 3, 3): batch=2, channels=3, 16x16.
    imgs = jax.random.normal(k_imgs, (2, 3, 16, 16), dtype=jnp.float32)

    # Default forward: pure identity, no kernel, no HBM traffic.
    out = example_model_forward(imgs)
    out = jax.block_until_ready(out)
    assert out.shape == imgs.shape and out.dtype == imgs.dtype
    assert bool(jnp.array_equal(out, imgs))

    # Explicit materialize path: single HBM->HBM DMA copy.
    copied = example_model_forward(imgs, materialize=True)
    copied = jax.block_until_ready(copied)
    assert copied.shape == imgs.shape and copied.dtype == imgs.dtype
    assert bool(jnp.array_equal(copied, imgs))

    # Larger tensor: still one DMA, no tiling / VMEM budget concerns.
    big = jax.random.normal(k_big, (4, 3, 256, 256), dtype=jnp.float32)
    big_copy = jax.block_until_ready(pallas_copy(big))
    assert bool(jnp.array_equal(big_copy, big))

    # Non-128-aligned element count: no padding or slicing needed anymore.
    odd = jax.random.normal(k_odd, (2, 3, 7, 7), dtype=jnp.float32)
    odd_copy = jax.block_until_ready(pallas_copy(odd))
    assert bool(jnp.array_equal(odd_copy, odd))

    # train_step smoke check (returns dict(result=imgs), identity pass-through).
    step_out = train_step(params, imgs)
    jax.block_until_ready(step_out["result"])
    assert bool(jnp.array_equal(step_out["result"], imgs))

    print("KERNEL_OK")
</pallas_src>

<mosaic_0001>
module attributes {stable_mosaic.version = 11 : i64} {
  func.func @_hbm_copy_kernel(%arg0: memref<2x3x16x16xf32, #tpu.memory_space<any>>, %arg1: memref<2x3x16x16xf32, #tpu.memory_space<any>>, %arg2: memref<!tpu.dma_semaphore, #tpu.memory_space<semaphore_mem>>) attributes {dimension_semantics = [], scalar_prefetch = 0 : i64, scratch_operands = 1 : i64, tpu.core_type = #tpu.core_type<tc>} {
    tpu.enqueue_dma source(%arg0 : memref<2x3x16x16xf32, #tpu.memory_space<any>>) target(%arg1 : memref<2x3x16x16xf32, #tpu.memory_space<any>>) target_semaphore(%arg2 : memref<!tpu.dma_semaphore, #tpu.memory_space<semaphore_mem>>)
    tpu.wait_dma2 semaphore(%arg2 : memref<!tpu.dma_semaphore, #tpu.memory_space<semaphore_mem>>) src(%arg0 : memref<2x3x16x16xf32, #tpu.memory_space<any>>) dst(%arg1 : memref<2x3x16x16xf32, #tpu.memory_space<any>>)
    return
  }
}

</mosaic_0001>

<bundles_post_ra>
// kernel: tpu_custom_call.1
= control target key start
LH: loop header
LB: loop body
LE: loop exit
PB: predicated region body
PF: predicated region fallthrough
CT: control target
= control target key end

     0   :  { %s30_s6 = smov [#allocation2]   ;;  %s31_s7 = smov 131072   ;;  %s49_s0 = inlined_call_operand.hbm [shape: f32[2,3,16,16], index: 0, kind: input, shape index: {}]   ;;  %s50_s1 = inlined_call_operand.hbm [shape: f32[2,3,16,16], index: 1, kind: output, shape index: {}]  }
   0x1   :  { %s32_s8 = smov 0  }
   0x2   :  { %12 = dma.general %s49_s0, 1536, %s50_s1, %s30_s6, %s31_s7, [#allocation4], %s32_s8, 0  }
   0x3   :  { %28 = dma.done.wait [#allocation2], 1536 }
   0x4   :  { %29 = vsyncadd [#allocation2], 4294965760 }
   0x5   :  { %18 = vsyncmov [#allocation2] }
   0x8   :  { %s19_s13 = vpop.sfrf %18 }
   0x9   :  { %p24_p0 = scmp.ne.s32.totalorder %s19_s13, 0 }
   0xb   :  { %23 = shalt.err (%p24_p0)  }

</bundles_post_ra>
